<compile_context>
chip_gen: v5e
topology: v5e:2x2
jax: 0.10.0
libtpu: 0.0.40
codegen_flags: <defaults>
</compile_context>

<pallas_src>
import jax
import jax.numpy as jnp
from jax.experimental import pallas as pl
from jax.experimental.pallas import tpu as pltpu

_LANE = 128
_SUBLANE = 8


def _round_up(n, m):
    return ((n + m - 1) // m) * m


def _local_mlp_kernel(x_ref, w1_ref, b1_ref, w2_ref, b2_ref, w3_ref, b3_ref, o_ref):
    # One (TB, D_in_p) batch tile per grid step; weights/biases resident in VMEM.
    x = x_ref[...]
    b1 = b1_ref[...]
    b2 = b2_ref[...]
    b3 = b3_ref[...]

    # Layer 1: Linear + ReLU   (Dropout = identity in eval)
    h1 = jnp.dot(x, w1_ref[...], preferred_element_type=jnp.float32) + b1
    h1 = jnp.maximum(h1, 0.0)

    # Layer 2: Linear + ReLU   (Dropout = identity in eval)
    h2 = jnp.dot(h1, w2_ref[...], preferred_element_type=jnp.float32) + b2
    h2 = jnp.maximum(h2, 0.0)

    # Layer 3: Linear -> padded quantile outputs, lane-dense store
    out = jnp.dot(h2, w3_ref[...], preferred_element_type=jnp.float32) + b3
    o_ref[...] = out.astype(o_ref.dtype)


def local_mlp_forward(x, params, *, block_b=512):
    """x: (B, input_dim) float32.  params: dict of zero-padded weights/biases."""
    w1, b1, w2, b2, w3, b3 = (
        params["w1"], params["b1"],
        params["w2"], params["b2"],
        params["w3"], params["b3"],
    )
    num_quantiles = params["num_quantiles"]

    B, d_in = x.shape
    D_in_p, H1_p = w1.shape
    H2_p = w2.shape[1]
    Q_p = w3.shape[1]

    # Batch tile: multiple of 8 sublanes, capped for VMEM.  Even at tb=512 the
    # double-buffered x/out tiles plus resident weights stay well under the
    # 32 MiB default scoped-VMEM limit (and under v7x's 64 MiB physical VMEM).
    tb = min(block_b, _round_up(B, _SUBLANE))
    tb = _round_up(tb, _SUBLANE)
    B_p = _round_up(B, tb)

    # Pad x to the padded feature width and to a whole number of batch tiles.
    if (B_p != B) or (D_in_p != d_in):
        x_p = jnp.zeros((B_p, D_in_p), x.dtype).at[:B, :d_in].set(x)
    else:
        x_p = x

    grid = (B_p // tb,)

    def resident(arr):
        # Full-array block with a constant index -> DMA'd once, stays in VMEM.
        return pl.BlockSpec(arr.shape, lambda i: (0, 0))

    flops = 2 * B_p * (D_in_p * H1_p + H1_p * H2_p + H2_p * Q_p)
    bytes_accessed = 4 * (
        x_p.size + w1.size + b1.size + w2.size + b2.size + w3.size + b3.size
        + B_p * Q_p
    )

    out_p = pl.pallas_call(
        _local_mlp_kernel,
        out_shape=jax.ShapeDtypeStruct((B_p, Q_p), jnp.float32),
        grid=grid,
        in_specs=[
            pl.BlockSpec((tb, D_in_p), lambda i: (i, 0)),  # x: batch-tiled
            resident(w1), resident(b1),
            resident(w2), resident(b2),
            resident(w3), resident(b3),
        ],
        out_specs=pl.BlockSpec((tb, Q_p), lambda i: (i, 0)),
        compiler_params=pltpu.CompilerParams(
            dimension_semantics=("parallel",),
        ),
        cost_estimate=pl.CostEstimate(
            flops=flops, transcendentals=0, bytes_accessed=bytes_accessed
        ),
    )(x_p, w1, b1, w2, b2, w3, b3)

    # Slice back to the logical batch / quantile widths.
    return out_p[:B, :num_quantiles]


def init_local_mlp_params(key, xf_feature_num, output_horizon, num_quantiles,
                          hidden_dim=10):
    """PyTorch nn.Linear-style init (uniform +/- 1/sqrt(fan_in)), then
    zero-padded so every feature axis is a multiple of 128 (lane-dense)."""
    input_dim = xf_feature_num * (1 + 1 + output_horizon)
    h2 = hidden_dim // 2
    keys = jax.random.split(key, 6)

    def linear_init(kw, kb, fan_in, fan_out):
        bound = 1.0 / jnp.sqrt(jnp.float32(fan_in))
        w = jax.random.uniform(kw, (fan_in, fan_out), jnp.float32, -bound, bound)
        b = jax.random.uniform(kb, (1, fan_out), jnp.float32, -bound, bound)
        return w, b

    w1, b1 = linear_init(keys[0], keys[1], input_dim, hidden_dim)
    w2, b2 = linear_init(keys[2], keys[3], hidden_dim, h2)
    w3, b3 = linear_init(keys[4], keys[5], h2, num_quantiles)

    def pad2(a, rows, cols):
        out = jnp.zeros((rows, cols), a.dtype)
        return out.at[: a.shape[0], : a.shape[1]].set(a)

    D_in_p = _round_up(input_dim, _LANE)
    H1_p = _round_up(hidden_dim, _LANE)
    H2_p = _round_up(h2, _LANE)
    Q_p = _round_up(num_quantiles, _LANE)

    return {
        "w1": pad2(w1, D_in_p, H1_p), "b1": pad2(b1, 1, H1_p),
        "w2": pad2(w2, H1_p, H2_p),   "b2": pad2(b2, 1, H2_p),
        "w3": pad2(w3, H2_p, Q_p),    "b3": pad2(b3, 1, Q_p),
        "input_dim": input_dim,
        "num_quantiles": num_quantiles,
    }


def _ref_forward(x, p):
    """Pure-JAX reference on the padded params (zero padding is exact)."""
    d_in = p["input_dim"]
    D_in_p = p["w1"].shape[0]
    B = x.shape[0]
    x_p = jnp.zeros((B, D_in_p), x.dtype).at[:, :d_in].set(x)
    h1 = jnp.maximum(x_p @ p["w1"] + p["b1"], 0.0)
    h2 = jnp.maximum(h1 @ p["w2"] + p["b2"], 0.0)
    out = h2 @ p["w3"] + p["b3"]
    return out[:, : p["num_quantiles"]]


if __name__ == "__main__":
    quantiles = [0.1, 0.5, 0.9]
    num_quantiles = len(quantiles)

    # Small, module-consistent shapes.
    xf_feature_num = 4
    output_horizon = 6          # input_dim = 4 * (1 + 1 + 6) = 32
    hidden_dim = 10             # module default
    batch = 8

    key = jax.random.PRNGKey(0)
    k_param, k_x = jax.random.split(key)

    params = init_local_mlp_params(
        k_param, xf_feature_num, output_horizon, num_quantiles, hidden_dim
    )
    input_dim = xf_feature_num * (1 + 1 + output_horizon)
    x = jax.random.normal(k_x, (batch, input_dim), jnp.float32)

    out = local_mlp_forward(x, params)
    out = jax.block_until_ready(out)

    # Sanity check against a pure-JAX reference.
    ref = jax.block_until_ready(_ref_forward(x, params))
    assert out.shape == (batch, num_quantiles)
    assert jnp.allclose(out, ref, atol=1e-5, rtol=1e-5)

    print("KERNEL_OK")
</pallas_src>

<mosaic_0001>
module attributes {stable_mosaic.version = 11 : i64} {
  func.func @_local_mlp_kernel(%arg0: i32, %arg1: memref<8x128xf32, #tpu.memory_space<vmem>>, %arg2: memref<128x128xf32, #tpu.memory_space<vmem>>, %arg3: memref<1x128xf32, #tpu.memory_space<vmem>>, %arg4: memref<128x128xf32, #tpu.memory_space<vmem>>, %arg5: memref<1x128xf32, #tpu.memory_space<vmem>>, %arg6: memref<128x128xf32, #tpu.memory_space<vmem>>, %arg7: memref<1x128xf32, #tpu.memory_space<vmem>>, %arg8: memref<8x128xf32, #tpu.memory_space<vmem>>) attributes {dimension_semantics = [#tpu.dimension_semantics<parallel>], iteration_bounds = array<i64: 1>, scalar_prefetch = 0 : i64, scratch_operands = 0 : i64, tpu.core_type = #tpu.core_type<tc>, window_params = [{transform_indices = @transform_0, window_bounds = array<i64: 8, 128>}, {pipeline_mode = #tpu.pipeline_mode<synchronous>, transform_indices = @transform_1, window_bounds = array<i64: 128, 128>}, {pipeline_mode = #tpu.pipeline_mode<synchronous>, transform_indices = @transform_2, window_bounds = array<i64: 1, 128>}, {pipeline_mode = #tpu.pipeline_mode<synchronous>, transform_indices = @transform_3, window_bounds = array<i64: 128, 128>}, {pipeline_mode = #tpu.pipeline_mode<synchronous>, transform_indices = @transform_4, window_bounds = array<i64: 1, 128>}, {pipeline_mode = #tpu.pipeline_mode<synchronous>, transform_indices = @transform_5, window_bounds = array<i64: 128, 128>}, {pipeline_mode = #tpu.pipeline_mode<synchronous>, transform_indices = @transform_6, window_bounds = array<i64: 1, 128>}, {transform_indices = @transform_7, window_bounds = array<i64: 8, 128>}]} {
    %c0 = arith.constant 0 : index
    %c0_0 = arith.constant 0 : index
    %0 = vector.load %arg1[%c0, %c0_0] : memref<8x128xf32, #tpu.memory_space<vmem>>, vector<8x128xf32>
    %c0_1 = arith.constant 0 : index
    %c0_2 = arith.constant 0 : index
    %1 = vector.load %arg3[%c0_1, %c0_2] : memref<1x128xf32, #tpu.memory_space<vmem>>, vector<1x128xf32>
    %c0_3 = arith.constant 0 : index
    %c0_4 = arith.constant 0 : index
    %2 = vector.load %arg5[%c0_3, %c0_4] : memref<1x128xf32, #tpu.memory_space<vmem>>, vector<1x128xf32>
    %c0_5 = arith.constant 0 : index
    %c0_6 = arith.constant 0 : index
    %3 = vector.load %arg7[%c0_5, %c0_6] : memref<1x128xf32, #tpu.memory_space<vmem>>, vector<1x128xf32>
    %c0_7 = arith.constant 0 : index
    %c0_8 = arith.constant 0 : index
    %4 = vector.load %arg2[%c0_7, %c0_8] : memref<128x128xf32, #tpu.memory_space<vmem>>, vector<128x128xf32>
    %cst = arith.constant dense<0.000000e+00> : vector<8x128xf32>
    %5 = tpu.matmul %0, %4, %cst {dimension_numbers = #tpu.dot_dimension_numbers<[1], [0], [0], [1], [0, 0, 1, 1], [], []>} : vector<8x128xf32>, vector<128x128xf32>, vector<8x128xf32> -> vector<8x128xf32>
    %6 = vector.broadcast %1 : vector<1x128xf32> to vector<8x128xf32>
    %7 = arith.addf %5, %6 : vector<8x128xf32>
    %cst_9 = arith.constant 0.000000e+00 : f32
    %8 = vector.broadcast %cst_9 : f32 to vector<8x128xf32>
    %9 = arith.maximumf %7, %8 : vector<8x128xf32>
    %c0_10 = arith.constant 0 : index
    %c0_11 = arith.constant 0 : index
    %10 = vector.load %arg4[%c0_10, %c0_11] : memref<128x128xf32, #tpu.memory_space<vmem>>, vector<128x128xf32>
    %cst_12 = arith.constant dense<0.000000e+00> : vector<8x128xf32>
    %11 = tpu.matmul %9, %10, %cst_12 {dimension_numbers = #tpu.dot_dimension_numbers<[1], [0], [0], [1], [0, 0, 1, 1], [], []>} : vector<8x128xf32>, vector<128x128xf32>, vector<8x128xf32> -> vector<8x128xf32>
    %12 = vector.broadcast %2 : vector<1x128xf32> to vector<8x128xf32>
    %13 = arith.addf %11, %12 : vector<8x128xf32>
    %cst_13 = arith.constant 0.000000e+00 : f32
    %14 = vector.broadcast %cst_13 : f32 to vector<8x128xf32>
    %15 = arith.maximumf %13, %14 : vector<8x128xf32>
    %c0_14 = arith.constant 0 : index
    %c0_15 = arith.constant 0 : index
    %16 = vector.load %arg6[%c0_14, %c0_15] : memref<128x128xf32, #tpu.memory_space<vmem>>, vector<128x128xf32>
    %cst_16 = arith.constant dense<0.000000e+00> : vector<8x128xf32>
    %17 = tpu.matmul %15, %16, %cst_16 {dimension_numbers = #tpu.dot_dimension_numbers<[1], [0], [0], [1], [0, 0, 1, 1], [], []>} : vector<8x128xf32>, vector<128x128xf32>, vector<8x128xf32> -> vector<8x128xf32>
    %18 = vector.broadcast %3 : vector<1x128xf32> to vector<8x128xf32>
    %19 = arith.addf %17, %18 : vector<8x128xf32>
    %c0_17 = arith.constant 0 : index
    %c0_18 = arith.constant 0 : index
    %20 = vector.load %arg8[%c0_17, %c0_18] : memref<8x128xf32, #tpu.memory_space<vmem>>, vector<8x128xf32>
    tpu.vector_store %arg8[%c0_17, %c0_18], %19 {strides = array<i32>} : memref<8x128xf32, #tpu.memory_space<vmem>>, vector<8x128xf32>,
    return
  }
  func.func @transform_0(%arg0: i32) -> (i32, i32) {
    %c0_i32 = arith.constant 0 : i32
    %c0_i32_0 = arith.constant 0 : i32
    return %arg0, %c0_i32 : i32, i32
  }
  func.func @transform_1(%arg0: i32) -> (i32, i32) {
    %c0_i32 = arith.constant 0 : i32
    %c0_i32_0 = arith.constant 0 : i32
    %c0_i32_1 = arith.constant 0 : i32
    return %c0_i32, %c0_i32_0 : i32, i32
  }
  func.func @transform_2(%arg0: i32) -> (i32, i32) {
    %c0_i32 = arith.constant 0 : i32
    %c0_i32_0 = arith.constant 0 : i32
    %c0_i32_1 = arith.constant 0 : i32
    return %c0_i32, %c0_i32_0 : i32, i32
  }
  func.func @transform_3(%arg0: i32) -> (i32, i32) {
    %c0_i32 = arith.constant 0 : i32
    %c0_i32_0 = arith.constant 0 : i32
    %c0_i32_1 = arith.constant 0 : i32
    return %c0_i32, %c0_i32_0 : i32, i32
  }
  func.func @transform_4(%arg0: i32) -> (i32, i32) {
    %c0_i32 = arith.constant 0 : i32
    %c0_i32_0 = arith.constant 0 : i32
    %c0_i32_1 = arith.constant 0 : i32
    return %c0_i32, %c0_i32_0 : i32, i32
  }
  func.func @transform_5(%arg0: i32) -> (i32, i32) {
    %c0_i32 = arith.constant 0 : i32
    %c0_i32_0 = arith.constant 0 : i32
    %c0_i32_1 = arith.constant 0 : i32
    return %c0_i32, %c0_i32_0 : i32, i32
  }
  func.func @transform_6(%arg0: i32) -> (i32, i32) {
    %c0_i32 = arith.constant 0 : i32
    %c0_i32_0 = arith.constant 0 : i32
    %c0_i32_1 = arith.constant 0 : i32
    return %c0_i32, %c0_i32_0 : i32, i32
  }
  func.func @transform_7(%arg0: i32) -> (i32, i32) {
    %c0_i32 = arith.constant 0 : i32
    %c0_i32_0 = arith.constant 0 : i32
    return %arg0, %c0_i32 : i32, i32
  }
}

</mosaic_0001>

<bundles_post_ra>
// kernel: tpu_custom_call.1
= control target key start
LH: loop header
LB: loop body
LE: loop exit
PB: predicated region body
PF: predicated region fallthrough
CT: control target
= control target key end

     0   :  { %12 = vsyncpa [#allocation3], 0  ;;  %s440_s0 = inlined_call_operand.hbm [shape: f32[8,128], index: 0, kind: input, shape index: {}]   ;;  %s441_s1 = inlined_call_operand.hbm [shape: f32[128,128], index: 1, kind: input, shape index: {}]   ;;  %s442_s2 = inlined_call_operand.vmem [shape: f32[1,128], index: 2, kind: input, shape index: {}]   ;;  %s443_s3 = inlined_call_operand.hbm [shape: f32[128,128], index: 3, kind: input, shape index: {}]   ;;  %s444_s4 = inlined_call_operand.vmem [shape: f32[1,128], index: 4, kind: input, shape index: {}]   ;;  %s445_s5 = inlined_call_operand.hbm [shape: f32[128,128], index: 5, kind: input, shape index: {}]   ;;  %s446_s6 = inlined_call_operand.vmem [shape: f32[1,128], index: 6, kind: input, shape index: {}]   ;;  %s447_s7 = inlined_call_operand.hbm [shape: f32[8,128], index: 7, kind: output, shape index: {}]  }
   0x1   :  { %13 = vsyncpa [#allocation6], 0 }
   0x2   :  { %14 = vsyncpa [#allocation9], 0  ;;  %s31_s26 = sshll.u32 %s441_s1, 4  ;;  %s32_s26 = int_to_ptr.hbm [resolvable:$true] %s31_s26 }
   0x3   :  { %15 = vsyncpa [#allocation4], 0  ;;  %s369_s27 = smov [#allocation5]   ;;  %s21_s8 = sshll.u32 %s440_s0, 4  ;;  %s22_s8 = int_to_ptr.hbm [resolvable:$true] %s21_s8 }
   0x4   :  { %s33_s28 = sshll.u32 %s369_s27, 4  ;;  %s370_s9 = smov 128   ;;  %s34_s28 = int_to_ptr.vmem [resolvable:$true] %s33_s28 }
   0x5   :  { %s371_s10 = smov 8   ;;  %s372_s11 = smov [#allocation2]  }
   0x6   :  { %39 = dma.hbm_to_vmem [thread:$0]  %s32_s26, 2048, %s34_s28, [#allocation6], %s370_s9, %s370_s9, %s371_s10  }
   0x7   :  { %s23_s12 = sshll.u32 %s372_s11, 4  ;;  %s46_s15 = sshll.u32 %s443_s3, 4  ;;  %s24_s12 = int_to_ptr.vmem [resolvable:$true] %s23_s12  ;;  %s47_s15 = int_to_ptr.hbm [resolvable:$true] %s46_s15 }
   0x8   :  { %26 = dma.hbm_to_vmem [thread:$0]  %s22_s8, 128, %s24_s12, [#allocation3]  }
   0x9   :  { %s61_s17 = sshll.u32 %s445_s5, 4  ;;  %s373_s18 = smov [#allocation7]   ;;  %s62_s17 = int_to_ptr.hbm [resolvable:$true] %s61_s17 }
   0xa   :  { %s48_s19 = sshll.u32 %s373_s18, 4  ;;  %s374_s0 = smov [#allocation8]   ;;  %s49_s19 = int_to_ptr.vmem [resolvable:$true] %s48_s19 }
   0xb   :  { %54 = dma.hbm_to_vmem [thread:$0]  %s47_s15, 2048, %s49_s19, [#allocation6], %s370_s9, %s370_s9, %s371_s10  }
   0xc   :  { %s63_s20 = sshll.u32 %s374_s0, 4  ;;  %s64_s20 = int_to_ptr.vmem [resolvable:$true] %s63_s20 }
   0xd   :  { %69 = dma.hbm_to_vmem [thread:$0]  %s62_s17, 2048, %s64_s20, [#allocation9], %s370_s9, %s370_s9, %s371_s10  }
   0xe   :  { %361 = dma.done.wait [#allocation3], 128  }
   0xf   :  { %362 = vsyncadd [#allocation3], 4294967168 }
  0x10   :  { %363 = dma.done.wait [#allocation6], 4096  }
  0x11   :  { %364 = vsyncadd [#allocation6], 4294963200 }
  0x12   :  { %365 = dma.done.wait [#allocation9], 2048  }
  0x13   :  { %366 = vsyncadd [#allocation9], 4294965248  ;;  %v107_v0 = vld [vmem:[#allocation5 + $0x78] sm:$0xff]  ;;  %v106_v1 = vld [vmem:[#allocation5 + $0x70] sm:$0xff]  ;;  %s375_s24 = smov [#allocation10]   ;;  %s219_s28 = sshll.u32 %s447_s7, 4  ;;  %s220_s28 = int_to_ptr.hbm [resolvable:$true] %s219_s28 }
  0x14   :  { %111 = vmatpush.msra.mxu0 %v107_v0  ;;  %v105_v2 = vld [vmem:[#allocation5 + $0x68] sm:$0xff]  ;;  %v104_v3 = vld [vmem:[#allocation5 + $0x60] sm:$0xff]  ;;  %v147_v4 = vld [vmem:[#allocation7 + $0x78] sm:$0xff]  ;;  %s217_s25 = sshll.u32 %s375_s24, 4  ;;  %s218_s25 = int_to_ptr.vmem [resolvable:$true] %s217_s25 }
  0x15   :  { %v103_v5 = vld [vmem:[#allocation5 + $0x58] sm:$0xff]  ;;  %151 = vmatpush.msra.mxu1 %v147_v4  ;;  %v146_v6 = vld [vmem:[#allocation7 + $0x70] sm:$0xff]  ;;  %v145_v7 = vld [vmem:[#allocation7 + $0x68] sm:$0xff] }
  0x16   :  { %112 = vmatpush.msra.mxu0 %v106_v1  ;;  %v102_v8 = vld [vmem:[#allocation5 + $0x50] sm:$0xff]  ;;  %v144_v9 = vld [vmem:[#allocation7 + $0x60] sm:$0xff]  ;;  %v101_v10 = vld [vmem:[#allocation5 + $0x48] sm:$0xff] }
  0x17   :  { %152 = vmatpush.msra.mxu1 %v146_v6  ;;  %v143_v11 = vld [vmem:[#allocation7 + $0x58] sm:$0xff]  ;;  %v100_v12 = vld [vmem:[#allocation5 + $0x40] sm:$0xff]  ;;  %v142_v13 = vld [vmem:[#allocation7 + $0x50] sm:$0xff] }
  0x18   :  { %113 = vmatpush.msra.mxu0 %v105_v2  ;;  %v99_v14 = vld [vmem:[#allocation5 + $0x38] sm:$0xff]  ;;  %v141_v15 = vld [vmem:[#allocation7 + $0x48] sm:$0xff]  ;;  %v98_v16 = vld [vmem:[#allocation5 + $0x30] sm:$0xff] }
  0x19   :  { %153 = vmatpush.msra.mxu1 %v145_v7  ;;  %v140_v17 = vld [vmem:[#allocation7 + $0x40] sm:$0xff]  ;;  %v97_v18 = vld [vmem:[#allocation5 + $0x28] sm:$0xff]  ;;  %v139_v19 = vld [vmem:[#allocation7 + $0x38] sm:$0xff] }
  0x1a   :  { %114 = vmatpush.msra.mxu0 %v104_v3  ;;  %v96_v20 = vld [vmem:[#allocation5 + $0x20] sm:$0xff]  ;;  %v138_v21 = vld [vmem:[#allocation7 + $0x30] sm:$0xff]  ;;  %v95_v22 = vld [vmem:[#allocation5 + $0x18] sm:$0xff] }
  0x1b   :  { %154 = vmatpush.msra.mxu1 %v144_v9  ;;  %v137_v23 = vld [vmem:[#allocation7 + $0x28] sm:$0xff]  ;;  %v94_v24 = vld [vmem:[#allocation5 + $0x10] sm:$0xff]  ;;  %v136_v25 = vld [vmem:[#allocation7 + $0x20] sm:$0xff] }
  0x1c   :  { %115 = vmatpush.msra.mxu0 %v103_v5  ;;  %v93_v26 = vld [vmem:[#allocation5 + $0x8] sm:$0xff]  ;;  %v135_v27 = vld [vmem:[#allocation7 + $0x18] sm:$0xff]  ;;  %v92_v28 = vld [vmem:[#allocation5] sm:$0xff] }
  0x1d   :  { %155 = vmatpush.msra.mxu1 %v143_v11  ;;  %v88_v29 = vld [vmem:[#allocation2] sm:$0xff]  ;;  %v134_v30 = vld [vmem:[#allocation7 + $0x10] sm:$0xff]  ;;  %v133_v31 = vld [vmem:[#allocation7 + $0x8] sm:$0xff] }
  0x1e   :  { %116 = vmatpush.msra.mxu0 %v102_v8  ;;  %v132_v32 = vld [vmem:[#allocation7] sm:$0xff]  ;;  %v187_v33 = vld [vmem:[#allocation8 + $0x78] sm:$0xff]  ;;  %v186_v34 = vld [vmem:[#allocation8 + $0x70] sm:$0xff] }
  0x1f   :  { %156 = vmatpush.msra.mxu1 %v142_v13  ;;  %191 = vmatpush.msra.mxu2 %v187_v33  ;;  %v185_v35 = vld [vmem:[#allocation8 + $0x68] sm:$0xff]  ;;  %v184_v36 = vld [vmem:[#allocation8 + $0x60] sm:$0xff]  ;;  %v183_v37 = vld [vmem:[#allocation8 + $0x58] sm:$0xff] }
  0x20   :  { %117 = vmatpush.msra.mxu0 %v101_v10  ;;  %v182_v38 = vld [vmem:[#allocation8 + $0x50] sm:$0xff]  ;;  %v181_v39 = vld [vmem:[#allocation8 + $0x48] sm:$0xff]  ;;  %v180_v40 = vld [vmem:[#allocation8 + $0x40] sm:$0xff] }
  0x21   :  { %157 = vmatpush.msra.mxu1 %v141_v15  ;;  %192 = vmatpush.msra.mxu2 %v186_v34  ;;  %v179_v41 = vld [vmem:[#allocation8 + $0x38] sm:$0xff]  ;;  %v178_v42 = vld [vmem:[#allocation8 + $0x30] sm:$0xff]  ;;  %v177_v43 = vld [vmem:[#allocation8 + $0x28] sm:$0xff] }
  0x22   :  { %118 = vmatpush.msra.mxu0 %v100_v12  ;;  %v176_v44 = vld [vmem:[#allocation8 + $0x20] sm:$0xff]  ;;  %v175_v45 = vld [vmem:[#allocation8 + $0x18] sm:$0xff]  ;;  %v174_v50 = vld [vmem:[#allocation8 + $0x10] sm:$0xff] }
  0x23   :  { %158 = vmatpush.msra.mxu1 %v140_v17  ;;  %193 = vmatpush.msra.mxu2 %v185_v35  ;;  %v238_v46 = vld [vmem:[%s442_s2] ss:$0 sm:$0xff]  ;;  %v173_v51 = vld [vmem:[#allocation8 + $0x8] sm:$0xff]  ;;  %v172_v52 = vld [vmem:[#allocation8] sm:$0xff] }
  0x24   :  { %119 = vmatpush.msra.mxu0 %v99_v14  ;;  %v239_v53 = vld [vmem:[%s444_s4] ss:$0 sm:$0xff] }
  0x25   :  { %159 = vmatpush.msra.mxu1 %v139_v19  ;;  %194 = vmatpush.msra.mxu2 %v184_v36  ;;  %v240_v57 = vld [vmem:[%s446_s6] ss:$0 sm:$0xff] }
  0x26   :  { %120 = vmatpush.msra.mxu0 %v98_v16 }
  0x27   :  { %160 = vmatpush.msra.mxu1 %v138_v21  ;;  %195 = vmatpush.msra.mxu2 %v183_v37 }
  0x28   :  { %121 = vmatpush.msra.mxu0 %v97_v18 }
  0x29   :  { %161 = vmatpush.msra.mxu1 %v137_v23  ;;  %196 = vmatpush.msra.mxu2 %v182_v38 }
  0x2a   :  { %122 = vmatpush.msra.mxu0 %v96_v20 }
  0x2b   :  { %162 = vmatpush.msra.mxu1 %v136_v25  ;;  %197 = vmatpush.msra.mxu2 %v181_v39 }
  0x2c   :  { %123 = vmatpush.msra.mxu0 %v95_v22 }
  0x2d   :  { %163 = vmatpush.msra.mxu1 %v135_v27  ;;  %198 = vmatpush.msra.mxu2 %v180_v40 }
  0x2e   :  { %124 = vmatpush.msra.mxu0 %v94_v24 }
  0x2f   :  { %164 = vmatpush.msra.mxu1 %v134_v30  ;;  %199 = vmatpush.msra.mxu2 %v179_v41 }
  0x30   :  { %125 = vmatpush.msra.mxu0 %v93_v26 }
  0x31   :  { %165 = vmatpush.msra.mxu1 %v133_v31  ;;  %200 = vmatpush.msra.mxu2 %v178_v42 }
  0x32   :  { %126 = vmatpush.msra.mxu0 %v92_v28 }
  0x33   :  { %127 = vmatmul.f32.vlgmr.msra.gmra.mxu0 %v88_v29  ;;  %166 = vmatpush.msra.mxu1 %v132_v32 }
  0x34   :  { %201 = vmatpush.msra.mxu2 %v177_v43 }
  0x36   :  { %202 = vmatpush.msra.mxu2 %v176_v44 }
  0x38   :  { %203 = vmatpush.msra.mxu2 %v175_v45 }
  0x3a   :  { %204 = vmatpush.msra.mxu2 %v174_v50 }
  0x3c   :  { %205 = vmatpush.msra.mxu2 %v173_v51 }
  0x3e   :  { %206 = vmatpush.msra.mxu2 %v172_v52 }
  0xb0   :  { %v128_v47 = vpop.f32.mrf.mxu0 }
  0xb1   :  { %v129_v48 = vadd.f32 %v238_v46, %v128_v47 }
  0xb3   :  { %v131_v49 = vmax.f32 %v129_v48, 0.0 }
  0xb5   :  { %167 = vmatmul.f32.vlgmr.msra.gmra.mxu1 %v131_v49 }
 0x132   :  { %v168_v54 = vpop.f32.mrf.mxu1 }
 0x133   :  { %v169_v55 = vadd.f32 %v239_v53, %v168_v54 }
 0x135   :  { %v171_v56 = vmax.f32 %v169_v55, 0.0 }
 0x137   :  { %207 = vmatmul.f32.vlgmr.msra.gmra.mxu2 %v171_v56 }
 0x1ba   :  { %v208_v58 = vpop.f32.mrf.mxu2 }
 0x1bb   :  { %v209_v59 = vadd.f32 %v240_v57, %v208_v58 }
 0x1bd   :  { %211 = vst [vmem:[#allocation10] sm:$0xff] %v209_v59 }
 0x1be   :  { %222 = dma.vmem_to_hbm [thread:$0]  %s218_s25, 128, %s220_s28, [#allocation4]  }
 0x1bf   :  { %367 = dma.done.wait [#allocation4], 128  }
 0x1c0   :  { %368 = vsyncadd [#allocation4], 4294967168 }
 0x1c1   :  { %227 = vsyncpa [#allocation3], 1 }
 0x1c2   :  { %228 = vsyncpa [#allocation6], 1 }
 0x1c3   :  { %229 = vsyncpa [#allocation9], 1 }
 0x1c4   :  { %230 = vsyncpa [#allocation4], 1 }

</bundles_post_ra>
